<compile_context>
chip_gen: v6e
topology: v6e:2x2x1
jax: 0.10.0
libtpu: 0.0.40
codegen_flags: <defaults>
</compile_context>

<pallas_src>
import functools

import jax
import jax.numpy as jnp
import numpy as np
from jax.experimental import pallas as pl
from jax.experimental.pallas import tpu as pltpu


def _biasfree_ln_kernel(x_ref, w_ref, o_ref, *, eps):
    # x_ref: (TR, C) row tile; w_ref: (1, C) weight; o_ref: (TR, C) output tile.
    x = x_ref[...].astype(jnp.float32)          # cast in-kernel (v5e VPU has no bf16)
    w = w_ref[...].astype(jnp.float32)          # (1, C), broadcasts over rows
    c = x.shape[-1]
    inv_c = 1.0 / c
    mean = jnp.sum(x, axis=-1, keepdims=True) * inv_c
    xc = x - mean
    var = jnp.sum(xc * xc, axis=-1, keepdims=True) * inv_c   # unbiased=False
    inv_std = 1.0 / jnp.sqrt(var + eps)
    o_ref[...] = (x * inv_std * w).astype(o_ref.dtype)


def _pick_row_tile(n_rows, c, itemsize):
    """Largest row tile that (a) divides n_rows, (b) is a multiple of 8 and
    (c) keeps the double-buffered x+out blocks well inside scoped VMEM."""
    if n_rows % 8 != 0:
        return n_rows  # full extent satisfies the (8,128) constraint
    # ~2 MiB per block per array (x, out), x2 for double buffering -> ~8 MiB total.
    budget_bytes = 2 * 1024 * 1024
    max_tr = max(8, budget_bytes // max(1, c * itemsize))
    best = 8
    tr = 8
    upper = min(n_rows, max_tr)
    while tr <= upper:
        if n_rows % tr == 0:
            best = tr
        tr += 8
    return best


def biasfree_layernorm(x, weight, eps=1e-5):
    """x: (..., C); weight: (C,).  Returns array of same shape and dtype as x."""
    orig_shape = x.shape
    c = orig_shape[-1]
    n_rows = int(np.prod(orig_shape[:-1]))
    x2 = x.reshape(n_rows, c)
    w2 = weight.reshape(1, c)

    tr = _pick_row_tile(n_rows, c, x.dtype.itemsize)
    grid = (n_rows // tr,)

    out2 = pl.pallas_call(
        functools.partial(_biasfree_ln_kernel, eps=eps),
        out_shape=jax.ShapeDtypeStruct((n_rows, c), x.dtype),
        grid_spec=pltpu.PrefetchScalarGridSpec(
            num_scalar_prefetch=0,
            grid=grid,
            in_specs=[
                pl.BlockSpec((tr, c), lambda i: (i, 0)),   # x row tile
                pl.BlockSpec((1, c), lambda i: (0, 0)),    # weight, resident
            ],
            out_specs=pl.BlockSpec((tr, c), lambda i: (i, 0)),
        ),
        compiler_params=pltpu.CompilerParams(
            dimension_semantics=("parallel",),
        ),
    )(x2, w2)

    return out2.reshape(orig_shape)


def _biasfree_layernorm_reference(x, weight, eps=1e-5):
    """Pure-JAX mirror of the PyTorch forward."""
    xf = x.astype(jnp.float32)
    var = jnp.var(xf, axis=-1, keepdims=True)               # ddof=0 == unbiased=False
    out = xf / jnp.sqrt(var + eps) * weight.astype(jnp.float32)
    return out.astype(x.dtype)


if __name__ == "__main__":
    # Small, lane-dense demo: x is (B=2, H=8, W=8, C=128) -> 128 rows of 128 lanes.
    B, H, W, C = 2, 8, 8, 128
    key = jax.random.PRNGKey(0)
    kx, kw = jax.random.split(key)
    x = jax.random.normal(kx, (B, H, W, C), dtype=jnp.float32)
    # Module initializes weight to ones; use a non-trivial weight to exercise it.
    weight = 1.0 + 0.1 * jax.random.normal(kw, (C,), dtype=jnp.float32)

    out = biasfree_layernorm(x, weight)
    out = jax.block_until_ready(out)
    ref = _biasfree_layernorm_reference(x, weight)
    np.testing.assert_allclose(np.asarray(out), np.asarray(ref), rtol=1e-5, atol=1e-5)

    # bf16 path: bf16 stays bf16 in HBM; f32 math inside the kernel; bf16 output.
    x_bf16 = x.astype(jnp.bfloat16)
    out_bf16 = jax.block_until_ready(biasfree_layernorm(x_bf16, weight))
    ref_bf16 = _biasfree_layernorm_reference(x_bf16, weight)
    np.testing.assert_allclose(
        np.asarray(out_bf16, dtype=np.float32),
        np.asarray(ref_bf16, dtype=np.float32),
        rtol=5e-2, atol=5e-2,
    )

    print("KERNEL_OK")
</pallas_src>

<mosaic_0001>
module attributes {stable_mosaic.version = 11 : i64} {
  func.func @_biasfree_ln_kernel(%arg0: i32, %arg1: memref<128x128xf32, #tpu.memory_space<vmem>>, %arg2: memref<1x128xf32, #tpu.memory_space<vmem>>, %arg3: memref<128x128xf32, #tpu.memory_space<vmem>>) attributes {dimension_semantics = [#tpu.dimension_semantics<parallel>], iteration_bounds = array<i64: 1>, scalar_prefetch = 0 : i64, scratch_operands = 0 : i64, tpu.core_type = #tpu.core_type<tc>, window_params = [{transform_indices = @transform_0, window_bounds = array<i64: 128, 128>}, {pipeline_mode = #tpu.pipeline_mode<synchronous>, transform_indices = @transform_1, window_bounds = array<i64: 1, 128>}, {transform_indices = @transform_2, window_bounds = array<i64: 128, 128>}]} {
    %c0 = arith.constant 0 : index
    %c0_0 = arith.constant 0 : index
    %0 = vector.load %arg1[%c0, %c0_0] : memref<128x128xf32, #tpu.memory_space<vmem>>, vector<128x128xf32>
    %c0_1 = arith.constant 0 : index
    %c0_2 = arith.constant 0 : index
    %1 = vector.load %arg2[%c0_1, %c0_2] : memref<1x128xf32, #tpu.memory_space<vmem>>, vector<1x128xf32>
    %cst = arith.constant dense<0.000000e+00> : vector<128xf32>
    %2 = vector.multi_reduction <add>, %0, %cst [1] : vector<128x128xf32> to vector<128xf32>
    %3 = vector.shape_cast %2 : vector<128xf32> to vector<128x1xf32>
    %cst_3 = arith.constant 7.812500e-03 : f32
    %4 = vector.broadcast %cst_3 : f32 to vector<128x1xf32>
    %5 = arith.mulf %3, %4 : vector<128x1xf32>
    %6 = vector.broadcast %5 : vector<128x1xf32> to vector<128x128xf32>
    %7 = arith.subf %0, %6 : vector<128x128xf32>
    %8 = arith.mulf %7, %7 : vector<128x128xf32>
    %cst_4 = arith.constant dense<0.000000e+00> : vector<128xf32>
    %9 = vector.multi_reduction <add>, %8, %cst_4 [1] : vector<128x128xf32> to vector<128xf32>
    %10 = vector.shape_cast %9 : vector<128xf32> to vector<128x1xf32>
    %cst_5 = arith.constant 7.812500e-03 : f32
    %11 = vector.broadcast %cst_5 : f32 to vector<128x1xf32>
    %12 = arith.mulf %10, %11 : vector<128x1xf32>
    %cst_6 = arith.constant 9.99999974E-6 : f32
    %13 = vector.broadcast %cst_6 : f32 to vector<128x1xf32>
    %14 = arith.addf %12, %13 : vector<128x1xf32>
    %15 = math.sqrt %14 : vector<128x1xf32>
    %cst_7 = arith.constant 1.000000e+00 : f32
    %16 = vector.broadcast %cst_7 : f32 to vector<128x1xf32>
    %17 = arith.divf %16, %15 : vector<128x1xf32>
    %18 = vector.broadcast %17 : vector<128x1xf32> to vector<128x128xf32>
    %19 = arith.mulf %0, %18 : vector<128x128xf32>
    %20 = vector.broadcast %1 : vector<1x128xf32> to vector<128x128xf32>
    %21 = arith.mulf %19, %20 : vector<128x128xf32>
    %c0_8 = arith.constant 0 : index
    %c0_9 = arith.constant 0 : index
    %22 = vector.load %arg3[%c0_8, %c0_9] : memref<128x128xf32, #tpu.memory_space<vmem>>, vector<128x128xf32>
    tpu.vector_store %arg3[%c0_8, %c0_9], %21 {strides = array<i32>} : memref<128x128xf32, #tpu.memory_space<vmem>>, vector<128x128xf32>,
    return
  }
  func.func @transform_0(%arg0: i32) -> (i32, i32) {
    %c0_i32 = arith.constant 0 : i32
    %c0_i32_0 = arith.constant 0 : i32
    return %arg0, %c0_i32 : i32, i32
  }
  func.func @transform_1(%arg0: i32) -> (i32, i32) {
    %c0_i32 = arith.constant 0 : i32
    %c0_i32_0 = arith.constant 0 : i32
    %c0_i32_1 = arith.constant 0 : i32
    return %c0_i32, %c0_i32_0 : i32, i32
  }
  func.func @transform_2(%arg0: i32) -> (i32, i32) {
    %c0_i32 = arith.constant 0 : i32
    %c0_i32_0 = arith.constant 0 : i32
    return %arg0, %c0_i32 : i32, i32
  }
}

</mosaic_0001>

<bundles_post_ra>
// kernel: tpu_custom_call.1
= control target key start
LH: loop header
LB: loop body
LE: loop exit
PB: predicated region body
PF: predicated region fallthrough
CT: control target
= control target key end

     0   :  { %7 = vsyncpa [#allocation3], 0  ;;  %s804_s0 = inlined_call_operand.hbm [shape: f32[128,128], index: 0, kind: input, shape index: {}]   ;;  %s805_s1 = inlined_call_operand.vmem [shape: f32[1,128], index: 1, kind: input, shape index: {}]   ;;  %s806_s2 = inlined_call_operand.hbm [shape: f32[128,128], index: 2, kind: output, shape index: {}]  }
   0x1   :  { %8 = vsyncpa [#allocation4], 0  ;;  %s515_s9 = smov [#allocation2]  }
   0x2   :  { %s14_s10 = sshll.u32 %s515_s9, 4  ;;  %s15_s10 = int_to_ptr.vmem [resolvable:$true] %s14_s10 }
   0x3   :  { %s479_s11 = scalar_lea.vmem %s15_s10, 2048  ;;  %p484_p1 = scmp.lt.s32.totalorder %s15_s10, %s15_s10 }
   0x4   :  { %p480_p0 = scmp.ne.s32.totalorder %s15_s10, %s479_s11  ;;  %p485_p2 = scmp.lt.s32.totalorder %s479_s11, %s479_s11 }
   0x6   :  { %p486_p3 = por %p485_p2, %p484_p1 }
   0x8   :  { %p487_p4 = pnand %p486_p3, %p480_p0 }
   0xa   :  { %490 = shalt.err (!%p487_p4)
}
   0xb   :  { %s516_s12 = smov 128   ;;  %s517_s13 = smov 8  }
   0xc   :  { %20 = dma.hbm_to_vmem [thread:$0]  %s804_s0, 2048, %s15_s10, [#allocation3], %s516_s12, %s516_s12, %s517_s13  }
   0xd   :  { %511 = dma.done.wait [#allocation3], 2048  }
   0xe   :  { %512 = vsyncadd [#allocation3], 4294965248  ;;  %v540_v0 = vld [vmem:[#allocation2] sm:$0xff]  ;;  %v542_v1 = vld [vmem:[#allocation2 + $0x10] sm:$0xff] }
   0xf   :  { %43 = vadd.xlane.f32.xlu0 %v540_v0  ;;  %47 = vadd.xlane.f32.xlu1 %v542_v1  ;;  %v546_v2 = vld [vmem:[#allocation2 + $0x8] sm:$0xff]  ;;  %v548_v3 = vld [vmem:[#allocation2 + $0x18] sm:$0xff]  ;;  %v552_v4 = vld [vmem:[#allocation2 + $0x20] sm:$0xff] }
  0x10   :  { %v554_v5 = vld [vmem:[#allocation2 + $0x28] sm:$0xff]  ;;  %v558_v6 = vld [vmem:[#allocation2 + $0x30] sm:$0xff]  ;;  %v560_v7 = vld [vmem:[#allocation2 + $0x38] sm:$0xff] }
  0x11   :  { %v564_v8 = vld [vmem:[#allocation2 + $0x40] sm:$0xff]  ;;  %v566_v9 = vld [vmem:[#allocation2 + $0x48] sm:$0xff]  ;;  %v570_v10 = vld [vmem:[#allocation2 + $0x50] sm:$0xff] }
  0x12   :  { %v572_v11 = vld [vmem:[#allocation2 + $0x58] sm:$0xff]  ;;  %v576_v12 = vld [vmem:[#allocation2 + $0x60] sm:$0xff]  ;;  %v578_v13 = vld [vmem:[#allocation2 + $0x68] sm:$0xff] }
  0x13   :  { %45 = vadd.xlane.f32.xlu0 %v546_v2  ;;  %49 = vadd.xlane.f32.xlu1 %v548_v3  ;;  %v582_v14 = vld [vmem:[#allocation2 + $0x70] sm:$0xff]  ;;  %v584_v15 = vld [vmem:[#allocation2 + $0x78] sm:$0xff] }
  0x17   :  { %51 = vadd.xlane.f32.xlu0 %v552_v4  ;;  %53 = vadd.xlane.f32.xlu1 %v554_v5 }
  0x1b   :  { %55 = vadd.xlane.f32.xlu0 %v558_v6  ;;  %57 = vadd.xlane.f32.xlu1 %v560_v7 }
  0x1f   :  { %59 = vadd.xlane.f32.xlu0 %v564_v8  ;;  %61 = vadd.xlane.f32.xlu1 %v566_v9 }
  0x23   :  { %63 = vadd.xlane.f32.xlu0 %v570_v10  ;;  %65 = vadd.xlane.f32.xlu1 %v572_v11 }
  0x27   :  { %67 = vadd.xlane.f32.xlu0 %v576_v12  ;;  %69 = vadd.xlane.f32.xlu1 %v578_v13 }
  0x2b   :  { %71 = vadd.xlane.f32.xlu0 %v582_v14  ;;  %73 = vadd.xlane.f32.xlu1 %v584_v15 }
  0x98   :  { %v44_v16 = vpop.xlane.xlu0 %43  ;;  %v48_v17 = vpop.xlane.xlu1 %47 }
  0x99   :  { %v75_v18 = vmul.f32 0.0078125, %v44_v16  ;;  %v77_v19 = vmul.f32 0.0078125, %v48_v17 }
  0x9b   :  { %v91_v20 = vsub.f32 %v540_v0, %v75_v18  ;;  %v93_v21 = vsub.f32 %v542_v1, %v77_v19 }
  0x9c   :  { %v46_v22 = vpop.xlane.xlu0 %45  ;;  %v50_v23 = vpop.xlane.xlu1 %49 }
  0x9d   :  { %v76_v24 = vmul.f32 0.0078125, %v46_v22  ;;  %v107_v25 = vmul.f32 %v91_v20, %v91_v20  ;;  %v78_v26 = vmul.f32 0.0078125, %v50_v23  ;;  %v109_v27 = vmul.f32 %v93_v21, %v93_v21 }
  0x9f   :  { %123 = vadd.xlane.f32.xlu0 %v107_v25  ;;  %v92_v28 = vsub.f32 %v546_v2, %v76_v24  ;;  %v94_v29 = vsub.f32 %v548_v3, %v78_v26 }
  0xa0   :  { %v52_v30 = vpop.xlane.xlu0 %51  ;;  %v54_v31 = vpop.xlane.xlu1 %53 }
  0xa1   :  { %v79_v32 = vmul.f32 0.0078125, %v52_v30  ;;  %v108_v33 = vmul.f32 %v92_v28, %v92_v28  ;;  %v80_v34 = vmul.f32 0.0078125, %v54_v31  ;;  %v110_v35 = vmul.f32 %v94_v29, %v94_v29 }
  0xa3   :  { %127 = vadd.xlane.f32.xlu0 %v109_v27  ;;  %125 = vadd.xlane.f32.xlu1 %v108_v33  ;;  %v95_v36 = vsub.f32 %v552_v4, %v79_v32  ;;  %v96_v37 = vsub.f32 %v554_v5, %v80_v34 }
  0xa4   :  { %v56_v38 = vpop.xlane.xlu0 %55  ;;  %v58_v39 = vpop.xlane.xlu1 %57 }
  0xa5   :  { %v81_v40 = vmul.f32 0.0078125, %v56_v38  ;;  %v111_v41 = vmul.f32 %v95_v36, %v95_v36  ;;  %v82_v42 = vmul.f32 0.0078125, %v58_v39  ;;  %v112_v43 = vmul.f32 %v96_v37, %v96_v37 }
  0xa7   :  { %129 = vadd.xlane.f32.xlu1 %v110_v35  ;;  %131 = vadd.xlane.f32.xlu0 %v111_v41  ;;  %v97_v44 = vsub.f32 %v558_v6, %v81_v40  ;;  %v98_v45 = vsub.f32 %v560_v7, %v82_v42 }
  0xa8   :  { %v60_v46 = vpop.xlane.xlu0 %59  ;;  %v62_v47 = vpop.xlane.xlu1 %61 }
  0xa9   :  { %v83_v48 = vmul.f32 0.0078125, %v60_v46  ;;  %v113_v49 = vmul.f32 %v97_v44, %v97_v44  ;;  %v84_v50 = vmul.f32 0.0078125, %v62_v47  ;;  %v114_v51 = vmul.f32 %v98_v45, %v98_v45 }
  0xab   :  { %133 = vadd.xlane.f32.xlu1 %v112_v43  ;;  %135 = vadd.xlane.f32.xlu0 %v113_v49  ;;  %v99_v52 = vsub.f32 %v564_v8, %v83_v48  ;;  %v100_v53 = vsub.f32 %v566_v9, %v84_v50 }
  0xac   :  { %v64_v54 = vpop.xlane.xlu0 %63  ;;  %v66_v55 = vpop.xlane.xlu1 %65 }
  0xad   :  { %v85_v56 = vmul.f32 0.0078125, %v64_v54  ;;  %v115_v57 = vmul.f32 %v99_v52, %v99_v52  ;;  %v86_v58 = vmul.f32 0.0078125, %v66_v55  ;;  %v116_v59 = vmul.f32 %v100_v53, %v100_v53 }
  0xaf   :  { %137 = vadd.xlane.f32.xlu1 %v114_v51  ;;  %139 = vadd.xlane.f32.xlu0 %v115_v57  ;;  %v101_v60 = vsub.f32 %v570_v10, %v85_v56  ;;  %v102_v61 = vsub.f32 %v572_v11, %v86_v58 }
  0xb0   :  { %v68_v62 = vpop.xlane.xlu0 %67  ;;  %v70_v63 = vpop.xlane.xlu1 %69 }
  0xb1   :  { %v87_v16 = vmul.f32 0.0078125, %v68_v62  ;;  %v117_v17 = vmul.f32 %v101_v60, %v101_v60  ;;  %v88_v18 = vmul.f32 0.0078125, %v70_v63  ;;  %v118_v19 = vmul.f32 %v102_v61, %v102_v61 }
  0xb3   :  { %141 = vadd.xlane.f32.xlu1 %v116_v59  ;;  %143 = vadd.xlane.f32.xlu0 %v117_v17  ;;  %v103_v20 = vsub.f32 %v576_v12, %v87_v16  ;;  %v104_v21 = vsub.f32 %v578_v13, %v88_v18 }
  0xb4   :  { %v72_v22 = vpop.xlane.xlu0 %71  ;;  %v74_v23 = vpop.xlane.xlu1 %73 }
  0xb5   :  { %v89_v24 = vmul.f32 0.0078125, %v72_v22  ;;  %v119_v25 = vmul.f32 %v103_v20, %v103_v20  ;;  %v90_v26 = vmul.f32 0.0078125, %v74_v23  ;;  %v120_v27 = vmul.f32 %v104_v21, %v104_v21 }
  0xb7   :  { %145 = vadd.xlane.f32.xlu1 %v118_v19  ;;  %147 = vadd.xlane.f32.xlu0 %v119_v25  ;;  %v105_v28 = vsub.f32 %v582_v14, %v89_v24  ;;  %v106_v29 = vsub.f32 %v584_v15, %v90_v26 }
  0xb9   :  { %v121_v30 = vmul.f32 %v105_v28, %v105_v28  ;;  %v122_v31 = vmul.f32 %v106_v29, %v106_v29 }
  0xbb   :  { %149 = vadd.xlane.f32.xlu1 %v120_v27  ;;  %151 = vadd.xlane.f32.xlu0 %v121_v30 }
  0xbf   :  { %153 = vadd.xlane.f32.xlu1 %v122_v31 }
 0x128   :  { %v124_v32 = vpop.xlane.xlu0 %123 }
 0x129   :  { %v155_v33 = vmul.f32 0.0078125, %v124_v32 }
 0x12b   :  { %v171_v34 = vadd.f32 1e-05, %v155_v33 }
 0x12c   :  { %v126_v35 = vpop.xlane.xlu1 %125  ;;  %v128_v36 = vpop.xlane.xlu0 %127 }
 0x12d   :  { %407 = vrsqrt.f32 %v171_v34  ;;  %v156_v37 = vmul.f32 0.0078125, %v126_v35  ;;  %v157_v38 = vmul.f32 0.0078125, %v128_v36  ;;  %vm189_vm0 = vcmp.eq.f32.partialorder %v171_v34, inf }
 0x12e   :  { %vm191_vm1 = vcmp.eq.f32.partialorder %v171_v34, 0.0  ;;  %v192_v58 = vand.u32 2147483648, %v171_v34 }
 0x12f   :  { %v604_v39 = vadd.f32 1e-05, %v156_v37  ;;  %v606_v40 = vadd.f32 1e-05, %v157_v38 }
 0x130   :  { %v130_v41 = vpop.xlane.xlu1 %129  ;;  %v132_v42 = vpop.xlane.xlu0 %131 }
 0x131   :  { %v158_v43 = vmul.f32 0.0078125, %v130_v41  ;;  %v159_v44 = vmul.f32 0.0078125, %v132_v42  ;;  %409 = vrsqrt.f32 %v604_v39  ;;  %vm196_vm2 = vcmp.eq.f32.partialorder %v604_v39, inf }
 0x132   :  { %411 = vrsqrt.f32 %v606_v40  ;;  %vm198_vm3 = vcmp.eq.f32.partialorder %v604_v39, 0.0  ;;  %v199_v60 = vand.u32 2147483648, %v604_v39  ;;  %vm203_vm4 = vcmp.eq.f32.partialorder %v606_v40, inf }
 0x133   :  { %v610_v45 = vadd.f32 1e-05, %v158_v43  ;;  %v612_v46 = vadd.f32 1e-05, %v159_v44  ;;  %vm205_vm5 = vcmp.eq.f32.partialorder %v606_v40, 0.0  ;;  %v206_v21 = vand.u32 2147483648, %v606_v40 }
 0x134   :  { %v134_v47 = vpop.xlane.xlu1 %133  ;;  %v136_v48 = vpop.xlane.xlu0 %135 }
 0x135   :  { %v160_v49 = vmul.f32 0.0078125, %v134_v47  ;;  %v161_v50 = vmul.f32 0.0078125, %v136_v48  ;;  %413 = vrsqrt.f32 %v610_v45  ;;  %vm210_vm6 = vcmp.eq.f32.partialorder %v610_v45, inf }
 0x136   :  { %415 = vrsqrt.f32 %v612_v46  ;;  %vm212_vm7 = vcmp.eq.f32.partialorder %v610_v45, 0.0  ;;  %v213_v23 = vand.u32 2147483648, %v610_v45  ;;  %vm217_vm8 = vcmp.eq.f32.partialorder %v612_v46, inf }
 0x137   :  { %v616_v51 = vadd.f32 1e-05, %v160_v49  ;;  %v618_v52 = vadd.f32 1e-05, %v161_v50  ;;  %vm219_vm9 = vcmp.eq.f32.partialorder %v612_v46, 0.0  ;;  %v220_v30 = vand.u32 2147483648, %v612_v46 }
 0x138   :  { %v138_v53 = vpop.xlane.xlu1 %137  ;;  %v140_v54 = vpop.xlane.xlu0 %139 }
 0x139   :  { %v162_v55 = vmul.f32 0.0078125, %v138_v53  ;;  %v163_v56 = vmul.f32 0.0078125, %v140_v54  ;;  %417 = vrsqrt.f32 %v616_v51  ;;  %vm224_vm10 = vcmp.eq.f32.partialorder %v616_v51, inf }
 0x13a   :  { %v408_v57 = vpop.eup %407  ;;  %419 = vrsqrt.f32 %v618_v52  ;;  %vm226_vm11 = vcmp.eq.f32.partialorder %v616_v51, 0.0  ;;  %v227_v43 = vand.u32 2147483648, %v616_v51  ;;  %vm231_vm12 = vcmp.eq.f32.partialorder %v618_v52, inf }
 0x13b   :  { %v188_v59 = vmul.f32 %v408_v57, %v171_v34  ;;  %v626_v61 = vadd.f32 1e-05, %v162_v55  ;;  %v628_v62 = vadd.f32 1e-05, %v163_v56  ;;  %vm233_vm13 = vcmp.eq.f32.partialorder %v618_v52, 0.0 }
 0x13c   :  { %v142_v63 = vpop.xlane.xlu1 %141  ;;  %v144_v16 = vpop.xlane.xlu0 %143  ;;  %v234_v48 = vand.u32 2147483648, %v618_v52 }
 0x13d   :  { %v190_v17 = vsel %vm189_vm0, %v171_v34, %v188_v59  ;;  %v164_v18 = vmul.f32 0.0078125, %v142_v63  ;;  %v165_v19 = vmul.f32 0.0078125, %v144_v16  ;;  %421 = vrsqrt.f32 %v626_v61 }
 0x13e   :  { %v193_v20 = vsel %vm191_vm1, %v192_v58, %v190_v17  ;;  %v410_v22 = vpop.eup %409  ;;  %vm238_vm14 = vcmp.eq.f32.partialorder %v626_v61, inf  ;;  %vm240_vm15 = vcmp.eq.f32.partialorder %v626_v61, 0.0  ;;  %vm245_vm0 = vcmp.eq.f32.partialorder %v628_v62, inf }
 0x13f   :  { %423 = vrcp.f32 %v193_v20  ;;  %v412_v24 = vpop.eup %411  ;;  %v195_v25 = vmul.f32 %v410_v22, %v604_v39  ;;  %v641_v26 = vadd.f32 1e-05, %v164_v18  ;;  %v646_v31 = vadd.f32 1e-05, %v165_v19 }
 0x140   :  { %425 = vrsqrt.f32 %v628_v62  ;;  %v146_v27 = vpop.xlane.xlu1 %145  ;;  %v148_v28 = vpop.xlane.xlu0 %147  ;;  %v202_v29 = vmul.f32 %v412_v24, %v606_v40  ;;  %vm247_vm1 = vcmp.eq.f32.partialorder %v628_v62, 0.0  ;;  %v248_v19 = vand.u32 2147483648, %v628_v62 }
 0x141   :  { %v197_v32 = vsel %vm196_vm2, %v604_v39, %v195_v25  ;;  %427 = vrsqrt.f32 %v641_v26  ;;  %v166_v33 = vmul.f32 0.0078125, %v146_v27  ;;  %v167_v37 = vmul.f32 0.0078125, %v148_v28 }
 0x142   :  { %v414_v34 = vpop.eup %413  ;;  %v200_v35 = vsel %vm198_vm3, %v199_v60, %v197_v32  ;;  %v204_v36 = vsel %vm203_vm4, %v606_v40, %v202_v29  ;;  %429 = vrsqrt.f32 %v646_v31  ;;  %v241_v60 = vand.u32 2147483648, %v626_v61 }
 0x143   :  { %v416_v38 = vpop.eup %415  ;;  %431 = vrcp.f32 %v200_v35  ;;  %v207_v41 = vsel %vm205_vm5, %v206_v21, %v204_v36  ;;  %v209_v42 = vmul.f32 %v414_v34, %v610_v45  ;;  %v671_v40 = vadd.f32 1e-05, %v166_v33  ;;  %v702_v21 = vld [vmem:[%s805_s1] ss:$0 sm:$0xff]  ;;  %s518_s1 = smov [#allocation5]  }
 0x144   :  { %433 = vrcp.f32 %v207_v41  ;;  %v216_v39 = vmul.f32 %v416_v38, %v612_v46  ;;  %v150_v44 = vpop.xlane.xlu1 %149  ;;  %v152_v49 = vpop.xlane.xlu0 %151  ;;  %v679_v55 = vadd.f32 1e-05, %v167_v37  ;;  %vm252_vm2 = vcmp.eq.f32.partialorder %v641_v26, inf  ;;  %s390_s17 = sshll.u32 %s518_s1, 4  ;;  %s391_s17 = int_to_ptr.vmem [resolvable:$true] %s390_s17 }
 0x145   :  { %v211_v47 = vsel %vm210_vm6, %v610_v45, %v209_v42  ;;  %v168_v59 = vmul.f32 0.0078125, %v150_v44  ;;  %v169_v63 = vmul.f32 0.0078125, %v152_v49  ;;  %vm254_vm3 = vcmp.eq.f32.partialorder %v641_v26, 0.0  ;;  %s491_s18 = scalar_lea.vmem %s391_s17, 2048  ;;  %p496_p6 = scmp.lt.s32.totalorder %s391_s17, %s391_s17 }
 0x146   :  { %v418_v50 = vpop.eup %417  ;;  %v214_v53 = vsel %vm212_vm7, %v213_v23, %v211_v47  ;;  %v218_v54 = vsel %vm217_vm8, %v612_v46, %v216_v39  ;;  %v255_v33 = vand.u32 2147483648, %v641_v26  ;;  %vm259_vm4 = vcmp.eq.f32.partialorder %v646_v31, inf  ;;  %p492_p5 = scmp.ne.s32.totalorder %s391_s17, %s491_s18  ;;  %p497_p7 = scmp.lt.s32.totalorder %s491_s18, %s491_s18 }
 0x147   :  { %v420_v56 = vpop.eup %419  ;;  %435 = vrcp.f32 %v214_v53  ;;  %v221_v57 = vsel %vm219_vm9, %v220_v30, %v218_v54  ;;  %v223_v58 = vmul.f32 %v418_v50, %v616_v51  ;;  %v707_v23 = vadd.f32 1e-05, %v168_v59 }
 0x148   :  { %437 = vrcp.f32 %v221_v57  ;;  %v230_v45 = vmul.f32 %v420_v56, %v618_v52  ;;  %v154_v24 = vpop.xlane.xlu1 %153  ;;  %v711_v28 = vadd.f32 1e-05, %v169_v63  ;;  %vm261_vm5 = vcmp.eq.f32.partialorder %v646_v31, 0.0  ;;  %p498_p8 = por %p497_p7, %p496_p6 }
 0x149   :  { %v225_v16 = vsel %vm224_vm10, %v616_v51, %v223_v58  ;;  %439 = vrsqrt.f32 %v671_v40  ;;  %v170_v34 = vmul.f32 0.0078125, %v154_v24  ;;  %v262_v44 = vand.u32 2147483648, %v646_v31 }
 0x14a   :  { %v422_v46 = vpop.eup %421  ;;  %v228_v17 = vsel %vm226_vm11, %v227_v43, %v225_v16  ;;  %v232_v18 = vsel %vm231_vm12, %v618_v52, %v230_v45  ;;  %441 = vrsqrt.f32 %v679_v55  ;;  %vm266_vm6 = vcmp.eq.f32.partialorder %v671_v40, inf  ;;  %p499_p9 = pnand %p498_p8, %p492_p5 }
 0x14b   :  { %443 = vrcp.f32 %v228_v17  ;;  %v235_v22 = vsel %vm233_vm13, %v234_v48, %v232_v18  ;;  %v237_v51 = vmul.f32 %v422_v46, %v626_v61  ;;  %v742_v49 = vadd.f32 1e-05, %v170_v34 }
 0x14c   :  { %v424_v20 = vpop.eup %423  ;;  %445 = vrcp.f32 %v235_v22  ;;  %vm268_vm7 = vcmp.eq.f32.partialorder %v671_v40, 0.0  ;;  %vm273_vm8 = vcmp.eq.f32.partialorder %v679_v55, inf  ;;  %v276_v17 = vand.u32 2147483648, %v679_v55 }
 0x14d   :  { %v426_v25 = vpop.eup %425  ;;  %v331_v27 = vmul.f32 %v424_v20, %v540_v0  ;;  %v239_v29 = vsel %vm238_vm14, %v626_v61, %v237_v51  ;;  %447 = vrsqrt.f32 %v707_v23  ;;  %vm275_vm9 = vcmp.eq.f32.partialorder %v679_v55, 0.0 }
 0x14e   :  { %v244_v52 = vmul.f32 %v426_v25, %v628_v62  ;;  %v428_v30 = vpop.eup %427  ;;  %v242_v0 = vsel %vm240_vm15, %v241_v60, %v239_v29  ;;  %vm280_vm10 = vcmp.eq.f32.partialorder %v707_v23, inf  ;;  %vm282_vm11 = vcmp.eq.f32.partialorder %v707_v23, 0.0 }
 0x14f   :  { %v353_v32 = vmul.f32 %v702_v21, %v331_v27  ;;  %v430_v35 = vpop.eup %429  ;;  %449 = vrcp.f32 %v242_v0  ;;  %v251_v37 = vmul.f32 %v428_v30, %v641_v26  ;;  %v283_v27 = vand.u32 2147483648, %v707_v23 }
 0x150   :  { %v246_v36 = vsel %vm245_vm0, %v628_v62, %v244_v52  ;;  %v432_v38 = vpop.eup %431  ;;  %v258_v61 = vmul.f32 %v430_v35, %v646_v31  ;;  %451 = vrsqrt.f32 %v711_v28  ;;  %vm287_vm12 = vcmp.eq.f32.partialorder %v711_v28, inf }
 0x151   :  { %369 = vst [vmem:[#allocation5] sm:$0xff] %v353_v32  ;;  %v249_v41 = vsel %vm247_vm1, %v248_v19, %v246_v36  ;;  %v434_v42 = vpop.eup %433  ;;  %v332_v43 = vmul.f32 %v432_v38, %v546_v2  ;;  %v253_v39 = vsel %vm252_vm2, %v641_v26, %v251_v37  ;;  %v290_v34 = vand.u32 2147483648, %v711_v28 }
 0x152   :  { %453 = vrcp.f32 %v249_v41  ;;  %v333_v47 = vmul.f32 %v434_v42, %v542_v1  ;;  %v256_v62 = vsel %vm254_vm3, %v255_v33, %v253_v39  ;;  %v260_v48 = vsel %vm259_vm4, %v646_v31, %v258_v61 }
 0x153   :  { %v354_v50 = vmul.f32 %v702_v21, %v332_v43  ;;  %455 = vrcp.f32 %v256_v62  ;;  %v263_v2 = vsel %vm261_vm5, %v262_v44, %v260_v48  ;;  %vm289_vm13 = vcmp.eq.f32.partialorder %v711_v28, 0.0 }
 0x154   :  { %v436_v53 = vpop.eup %435  ;;  %v355_v54 = vmul.f32 %v702_v21, %v333_v47  ;;  %457 = vrcp.f32 %v263_v2  ;;  %vm294_vm14 = vcmp.eq.f32.partialorder %v742_v49, inf  ;;  %vm296_vm15 = vcmp.eq.f32.partialorder %v742_v49, 0.0 }
 0x155   :  { %v438_v56 = vpop.eup %437  ;;  %370 = vst [vmem:[#allocation5 + $0x8] sm:$0xff] %v354_v50  ;;  %v334_v57 = vmul.f32 %v436_v53, %v548_v3  ;;  %459 = vrsqrt.f32 %v742_v49  ;;  %v269_v3 = vand.u32 2147483648, %v671_v40 }
 0x156   :  { %v440_v1 = vpop.eup %439  ;;  %371 = vst [vmem:[#allocation5 + $0x10] sm:$0xff] %v355_v54  ;;  %v335_v26 = vmul.f32 %v438_v56, %v552_v4 }
 0x157   :  { %v442_v31 = vpop.eup %441  ;;  %v356_v58 = vmul.f32 %v702_v21, %v334_v57  ;;  %v265_v59 = vmul.f32 %v440_v1, %v671_v40 }
 0x158   :  { %v444_v45 = vpop.eup %443  ;;  %v357_v60 = vmul.f32 %v702_v21, %v335_v26  ;;  %v272_v63 = vmul.f32 %v442_v31, %v679_v55 }
 0x159   :  { %v446_v16 = vpop.eup %445  ;;  %372 = vst [vmem:[#allocation5 + $0x18] sm:$0xff] %v356_v58  ;;  %v336_v4 = vmul.f32 %v444_v45, %v554_v5  ;;  %v267_v46 = vsel %vm266_vm6, %v671_v40, %v265_v59 }
 0x15a   :  { %v448_v18 = vpop.eup %447  ;;  %373 = vst [vmem:[#allocation5 + $0x20] sm:$0xff] %v357_v60  ;;  %v337_v19 = vmul.f32 %v446_v16, %v558_v6  ;;  %v270_v20 = vsel %vm268_vm7, %v269_v3, %v267_v46  ;;  %v274_v22 = vsel %vm273_vm8, %v679_v55, %v272_v63 }
 0x15b   :  { %v358_v51 = vmul.f32 %v702_v21, %v336_v4  ;;  %461 = vrcp.f32 %v270_v20  ;;  %v277_v24 = vsel %vm275_vm9, %v276_v17, %v274_v22  ;;  %v279_v5 = vmul.f32 %v448_v18, %v707_v23 }
 0x15c   :  { %v450_v40 = vpop.eup %449  ;;  %v359_v25 = vmul.f32 %v702_v21, %v337_v19  ;;  %463 = vrcp.f32 %v277_v24 }
 0x15d   :  { %v452_v6 = vpop.eup %451  ;;  %374 = vst [vmem:[#allocation5 + $0x28] sm:$0xff] %v358_v51  ;;  %v338_v29 = vmul.f32 %v450_v40, %v560_v7  ;;  %v281_v55 = vsel %vm280_vm10, %v707_v23, %v279_v5 }
 0x15e   :  { %375 = vst [vmem:[#allocation5 + $0x30] sm:$0xff] %v359_v25  ;;  %v284_v30 = vsel %vm282_vm11, %v283_v27, %v281_v55  ;;  %v286_v32 = vmul.f32 %v452_v6, %v711_v28 }
 0x15f   :  { %v454_v52 = vpop.eup %453  ;;  %v360_v0 = vmul.f32 %v702_v21, %v338_v29  ;;  %465 = vrcp.f32 %v284_v30 }
 0x160   :  { %v339_v33 = vmul.f32 %v454_v52, %v564_v8  ;;  %v456_v35 = vpop.eup %455  ;;  %v288_v7 = vsel %vm287_vm12, %v711_v28, %v286_v32  ;;  %v297_v28 = vand.u32 2147483648, %v742_v49 }
 0x161   :  { %v458_v23 = vpop.eup %457  ;;  %376 = vst [vmem:[#allocation5 + $0x38] sm:$0xff] %v360_v0  ;;  %v340_v37 = vmul.f32 %v456_v35, %v566_v9  ;;  %v291_v38 = vsel %vm289_vm13, %v290_v34, %v288_v7 }
 0x162   :  { %v361_v36 = vmul.f32 %v702_v21, %v339_v33  ;;  %v460_v41 = vpop.eup %459  ;;  %v341_v61 = vmul.f32 %v458_v23, %v570_v10  ;;  %467 = vrcp.f32 %v291_v38 }
 0x163   :  { %v362_v8 = vmul.f32 %v702_v21, %v340_v37  ;;  %v293_v42 = vmul.f32 %v460_v41, %v742_v49 }
 0x164   :  { %377 = vst [vmem:[#allocation5 + $0x40] sm:$0xff] %v361_v36  ;;  %v363_v43 = vmul.f32 %v702_v21, %v341_v61 }
 0x165   :  { %378 = vst [vmem:[#allocation5 + $0x48] sm:$0xff] %v362_v8  ;;  %v295_v39 = vsel %vm294_vm14, %v742_v49, %v293_v42 }
 0x166   :  { %379 = vst [vmem:[#allocation5 + $0x50] sm:$0xff] %v363_v43  ;;  %v298_v9 = vsel %vm296_vm15, %v297_v28, %v295_v39 }
 0x167   :  { %469 = vrcp.f32 %v298_v9 }
 0x168   :  { %v462_v10 = vpop.eup %461 }
 0x169   :  { %v464_v44 = vpop.eup %463  ;;  %v342_v47 = vmul.f32 %v462_v10, %v572_v11 }
 0x16a   :  { %v343_v62 = vmul.f32 %v464_v44, %v576_v12 }
 0x16b   :  { %v364_v48 = vmul.f32 %v702_v21, %v342_v47 }
 0x16c   :  { %v466_v50 = vpop.eup %465  ;;  %v365_v2 = vmul.f32 %v702_v21, %v343_v62 }
 0x16d   :  { %380 = vst [vmem:[#allocation5 + $0x58] sm:$0xff] %v364_v48  ;;  %v344_v53 = vmul.f32 %v466_v50, %v578_v13 }
 0x16e   :  { %381 = vst [vmem:[#allocation5 + $0x60] sm:$0xff] %v365_v2 }
 0x16f   :  { %v468_v54 = vpop.eup %467  ;;  %v366_v49 = vmul.f32 %v702_v21, %v344_v53 }
 0x170   :  { %v345_v56 = vmul.f32 %v468_v54, %v582_v14 }
 0x171   :  { %382 = vst [vmem:[#allocation5 + $0x68] sm:$0xff] %v366_v49 }
 0x172   :  { %v367_v57 = vmul.f32 %v702_v21, %v345_v56 }
 0x174   :  { %v470_v11 = vpop.eup %469  ;;  %383 = vst [vmem:[#allocation5 + $0x70] sm:$0xff] %v367_v57 }
 0x175   :  { %v346_v12 = vmul.f32 %v470_v11, %v584_v15 }
 0x177   :  { %v368_v1 = vmul.f32 %v702_v21, %v346_v12 }
 0x179   :  { %384 = vst [vmem:[#allocation5 + $0x78] sm:$0xff] %v368_v1 }
 0x17a   :  { %502 = shalt.err (!%p499_p9)
}
 0x17b   :  { %396 = dma.vmem_to_hbm [thread:$0]  %s391_s17, 2048, %s806_s2, [#allocation4], %s516_s12, %s516_s12, %s517_s13  }
 0x17c   :  { %513 = dma.done.wait [#allocation4], 2048  }
 0x17d   :  { %514 = vsyncadd [#allocation4], 4294965248 }
 0x17e   :  { %400 = vsyncpa [#allocation3], 1 }
 0x17f   :  { %401 = vsyncpa [#allocation4], 1 }

</bundles_post_ra>
